<compile_context>
chip_gen: v7x
topology: tpu7x:2x2x1
jax: 0.10.0
libtpu: 0.0.40
codegen_flags: <defaults>
</compile_context>

<pallas_src>
import functools

import jax
import jax.numpy as jnp
from jax import lax
from jax.experimental import pallas as pl
from jax.experimental.pallas import tpu as pltpu


# ---------------------------------------------------------------------------
# Pass 1: normalized, head-concatenated feature slab.
# ---------------------------------------------------------------------------
def _feature_kernel(z_ref, wexp_ref, wsq_ref, f_ref, *, scale):
    # z_ref   : (1, T, D)     row block of Z
    # wexp_ref: (D, H*D)      wexp[d', h*D+d] = w[h,d] * (d' == d)
    # wsq_ref : (D, H*D)      wsq [d', h*D+d] = w[h,d']**2
    # f_ref   : (1, T, H*D)   output slab block
    z = z_ref[0].astype(jnp.float32)                               # (T, D)

    # Lane-dense per-head features via one small MXU matmul (no masked stores,
    # no per-head column slices).
    zw = jnp.dot(z, wexp_ref[...].astype(jnp.float32),
                 preferred_element_type=jnp.float32)               # (T, H*D)

    # Per-head squared norms, already broadcast to lane width by construction
    # of wsq (replaces 2*H cross-lane XLU reductions with one MXU op).
    ss = jnp.dot(z * z, wsq_ref[...].astype(jnp.float32),
                 preferred_element_type=jnp.float32)               # (T, H*D)

    # F.normalize: x / max(||x||, eps)  ==  x * rsqrt(max(ss, eps^2)); the 1/H
    # head-mean is folded in here as 1/sqrt(H) on each gram operand.
    inv = lax.rsqrt(jnp.maximum(ss, 1e-24)) * scale
    f_ref[0] = (zw * inv).astype(f_ref.dtype)


# ---------------------------------------------------------------------------
# Pass 2: tiled gram matmul + ReLU.
# ---------------------------------------------------------------------------
def _gram_kernel(fq_ref, fk_ref, o_ref):
    # fq_ref: (1, TQ, H*D), fk_ref: (1, TK, H*D), o_ref: (1, TQ, TK)
    gram = lax.dot_general(
        fq_ref[0], fk_ref[0],
        dimension_numbers=(((1,), (1,)), ((), ())),   # contract last dims: A @ B^T
        preferred_element_type=jnp.float32,
    )                                                              # (TQ, TK)
    # mask = (att > 0); att * mask  ==  relu(att)
    o_ref[0] = jnp.maximum(gram, 0.0).astype(o_ref.dtype)


# ---------------------------------------------------------------------------
# Wrapper.
# ---------------------------------------------------------------------------
def _round_up(x, m):
    return ((x + m - 1) // m) * m


def _pick_tile(n, cap=1024):
    # Largest convenient tile that divides the (already padded) n.
    for t in (1024, 512, 256, 128):
        if t <= cap and n % t == 0:
            return t
    return n  # n < 128 (and a multiple of 8): block == full dim, which is legal.


def global_graph_learner(Z, w, *, out_dtype=jnp.float32,
                         feature_dtype=jnp.float32):
    """Z: (B, N, D), w: (H, D)  ->  att_global (B, N, N)."""
    B, N, D = Z.shape
    H, Dw = w.shape
    assert D == Dw, "w feature dim must match Z feature dim"
    HD = H * D

    # Pad N so output tiles are (8,128)-aligned and bounded in size (fixes the
    # old full-N fallback that could blow v7x's 64 MiB VMEM for odd N).  Padded
    # rows produce exactly-zero features (0 * rsqrt(eps^2) == 0) and are
    # sliced off at the end.
    n_pad = _round_up(N, 8) if N <= 128 else _round_up(N, 128)
    if n_pad != N:
        Z = jnp.pad(Z, ((0, 0), (0, n_pad - N), (0, 0)))

    # Precompute the (D, H*D) expansion matrices in the wrapper (trace-time
    # constants, tiny).
    w32 = w.astype(jnp.float32)
    eye = jnp.eye(D, dtype=jnp.float32)
    w_exp = (eye[None, :, :] * w32[:, None, :]).transpose(1, 0, 2).reshape(D, HD)
    w_sq = jnp.repeat((w32 * w32).T, D, axis=1)                    # (D, H*D)

    # ---- pass 1: F = concat_h normalize(Z*w_h) / sqrt(H) : (B, n_pad, H*D) --
    t_feat = _pick_tile(n_pad)
    feat_kernel = functools.partial(_feature_kernel, scale=1.0 / (H ** 0.5))
    F = pl.pallas_call(
        feat_kernel,
        out_shape=jax.ShapeDtypeStruct((B, n_pad, HD), feature_dtype),
        grid_spec=pltpu.PrefetchScalarGridSpec(
            num_scalar_prefetch=0,
            grid=(B, n_pad // t_feat),
            in_specs=[
                pl.BlockSpec((1, t_feat, D), lambda b, i: (b, i, 0)),
                pl.BlockSpec((D, HD), lambda b, i: (0, 0)),
                pl.BlockSpec((D, HD), lambda b, i: (0, 0)),
            ],
            out_specs=pl.BlockSpec((1, t_feat, HD), lambda b, i: (b, i, 0)),
        ),
        compiler_params=pltpu.CompilerParams(
            dimension_semantics=("parallel", "parallel")),
    )(Z, w_exp, w_sq)

    # ---- pass 2: att = relu(F @ F^T), tiled over (B, N/tq, N/tk) ------------
    tq = _pick_tile(n_pad)
    tk = _pick_tile(n_pad)
    att = pl.pallas_call(
        _gram_kernel,
        out_shape=jax.ShapeDtypeStruct((B, n_pad, n_pad), out_dtype),
        grid_spec=pltpu.PrefetchScalarGridSpec(
            num_scalar_prefetch=0,
            grid=(B, n_pad // tq, n_pad // tk),
            in_specs=[
                pl.BlockSpec((1, tq, HD), lambda b, qi, ki: (b, qi, 0)),  # query rows
                pl.BlockSpec((1, tk, HD), lambda b, qi, ki: (b, ki, 0)),  # key rows
            ],
            out_specs=pl.BlockSpec((1, tq, tk), lambda b, qi, ki: (b, qi, ki)),
        ),
        compiler_params=pltpu.CompilerParams(
            # Every tile is independent -> all axes parallel (megacore on v7x).
            dimension_semantics=("parallel", "parallel", "parallel"),
            # ~10 MiB actually used at 1024x1024 tiles; 48 MiB stays below
            # v7x's 64 MiB physical VMEM while giving headroom on v5e/v6e.
            vmem_limit_bytes=48 * 1024 * 1024,
        ),
    )(F, F)

    if n_pad != N:
        att = att[:, :N, :N]
    return att


def _reference(Z, w):
    # Pure-JAX reference mirroring the PyTorch forward (non-random branch).
    Zh = Z[None, :, :, :] * w[:, None, None, :]                    # (H, B, N, D)
    nrm = jnp.sqrt(jnp.sum(Zh * Zh, axis=-1, keepdims=True))
    Zn = Zh / jnp.maximum(nrm, 1e-12)
    att = jnp.einsum("hbnd,hbmd->hbnm", Zn, Zn,
                     precision=lax.Precision.HIGHEST).mean(axis=0)
    return att * (att > 0).astype(att.dtype)


if __name__ == "__main__":
    B, N, D, H = 2, 8, 32, 4

    key = jax.random.PRNGKey(0)
    kz, kw = jax.random.split(key)

    Z = jax.random.normal(kz, (B, N, D), dtype=jnp.float32)

    # xavier_uniform_ for a (num_heads, d_in) tensor: bound = sqrt(6/(fan_in+fan_out))
    bound = (6.0 / (H + D)) ** 0.5
    w = jax.random.uniform(kw, (H, D), dtype=jnp.float32, minval=-bound, maxval=bound)

    # TODO(synk): the `random=True` branch (torch.randn attention) is RNG glue,
    # not a kernel hot path; only the learned (non-random) branch is implemented.

    out = jax.block_until_ready(global_graph_learner(Z, w))
    ref = _reference(Z, w)

    assert out.shape == (B, N, N)
    # Tolerance covers MXU f32 rounding differences vs XLA HIGHEST einsum.
    assert jnp.allclose(out, ref, atol=1e-4, rtol=1e-4), float(
        jnp.max(jnp.abs(out - ref)))

    print("KERNEL_OK")
</pallas_src>

<mosaic_0001>
module attributes {stable_mosaic.version = 11 : i64} {
  func.func @_feature_kernel(%arg0: i32, %arg1: i32, %arg2: memref<1x8x32xf32, #tpu.memory_space<vmem>>, %arg3: memref<32x128xf32, #tpu.memory_space<vmem>>, %arg4: memref<32x128xf32, #tpu.memory_space<vmem>>, %arg5: memref<1x8x128xf32, #tpu.memory_space<vmem>>) attributes {dimension_semantics = [#tpu.dimension_semantics<parallel>, #tpu.dimension_semantics<parallel>], iteration_bounds = array<i64: 2, 1>, scalar_prefetch = 0 : i64, scratch_operands = 0 : i64, tpu.core_type = #tpu.core_type<tc>, window_params = [{transform_indices = @transform_0, window_bounds = array<i64: 1, 8, 32>}, {pipeline_mode = #tpu.pipeline_mode<synchronous>, transform_indices = @transform_1, window_bounds = array<i64: 32, 128>}, {pipeline_mode = #tpu.pipeline_mode<synchronous>, transform_indices = @transform_2, window_bounds = array<i64: 32, 128>}, {transform_indices = @transform_3, window_bounds = array<i64: 1, 8, 128>}]} {
    %c0 = arith.constant 0 : index
    %c0_0 = arith.constant 0 : index
    %c0_1 = arith.constant 0 : index
    %0 = vector.load %arg2[%c0, %c0_0, %c0_1] : memref<1x8x32xf32, #tpu.memory_space<vmem>>, vector<1x8x32xf32>
    %1 = vector.shape_cast %0 : vector<1x8x32xf32> to vector<8x32xf32>
    %c0_2 = arith.constant 0 : index
    %c0_3 = arith.constant 0 : index
    %2 = vector.load %arg3[%c0_2, %c0_3] : memref<32x128xf32, #tpu.memory_space<vmem>>, vector<32x128xf32>
    %cst = arith.constant dense<0.000000e+00> : vector<8x128xf32>
    %3 = tpu.matmul %1, %2, %cst {dimension_numbers = #tpu.dot_dimension_numbers<[1], [0], [0], [1], [0, 0, 1, 1], [], []>} : vector<8x32xf32>, vector<32x128xf32>, vector<8x128xf32> -> vector<8x128xf32>
    %4 = arith.mulf %1, %1 : vector<8x32xf32>
    %c0_4 = arith.constant 0 : index
    %c0_5 = arith.constant 0 : index
    %5 = vector.load %arg4[%c0_4, %c0_5] : memref<32x128xf32, #tpu.memory_space<vmem>>, vector<32x128xf32>
    %cst_6 = arith.constant dense<0.000000e+00> : vector<8x128xf32>
    %6 = tpu.matmul %4, %5, %cst_6 {dimension_numbers = #tpu.dot_dimension_numbers<[1], [0], [0], [1], [0, 0, 1, 1], [], []>} : vector<8x32xf32>, vector<32x128xf32>, vector<8x128xf32> -> vector<8x128xf32>
    %cst_7 = arith.constant 1.000000e-24 : f32
    %7 = vector.broadcast %cst_7 : f32 to vector<8x128xf32>
    %8 = arith.maximumf %6, %7 : vector<8x128xf32>
    %9 = math.rsqrt %8 : vector<8x128xf32>
    %cst_8 = arith.constant 5.000000e-01 : f32
    %10 = vector.broadcast %cst_8 : f32 to vector<8x128xf32>
    %11 = arith.mulf %9, %10 : vector<8x128xf32>
    %12 = arith.mulf %3, %11 : vector<8x128xf32>
    %c0_9 = arith.constant 0 : index
    %c0_10 = arith.constant 0 : index
    %c0_11 = arith.constant 0 : index
    %13 = vector.load %arg5[%c0_9, %c0_10, %c0_11] : memref<1x8x128xf32, #tpu.memory_space<vmem>>, vector<1x8x128xf32>
    %14 = vector.shape_cast %13 : vector<1x8x128xf32> to vector<8x128xf32>
    %15 = vector.shape_cast %12 : vector<8x128xf32> to vector<1x8x128xf32>
    tpu.vector_store %arg5[%c0_9, %c0_10, %c0_11], %15 {strides = array<i32>} : memref<1x8x128xf32, #tpu.memory_space<vmem>>, vector<1x8x128xf32>,
    return
  }
  func.func @transform_0(%arg0: i32, %arg1: i32) -> (i32, i32, i32) {
    %c0_i32 = arith.constant 0 : i32
    %c0_i32_0 = arith.constant 0 : i32
    return %arg0, %arg1, %c0_i32 : i32, i32, i32
  }
  func.func @transform_1(%arg0: i32, %arg1: i32) -> (i32, i32) {
    %c0_i32 = arith.constant 0 : i32
    %c0_i32_0 = arith.constant 0 : i32
    %c0_i32_1 = arith.constant 0 : i32
    return %c0_i32, %c0_i32_0 : i32, i32
  }
  func.func @transform_2(%arg0: i32, %arg1: i32) -> (i32, i32) {
    %c0_i32 = arith.constant 0 : i32
    %c0_i32_0 = arith.constant 0 : i32
    %c0_i32_1 = arith.constant 0 : i32
    return %c0_i32, %c0_i32_0 : i32, i32
  }
  func.func @transform_3(%arg0: i32, %arg1: i32) -> (i32, i32, i32) {
    %c0_i32 = arith.constant 0 : i32
    %c0_i32_0 = arith.constant 0 : i32
    return %arg0, %arg1, %c0_i32 : i32, i32, i32
  }
}

</mosaic_0001>

<bundles_post_ra>
// kernel: tpu_custom_call.1
= control target key start
LH: loop header
LB: loop body
LE: loop exit
PB: predicated region body
PF: predicated region fallthrough
CT: control target
= control target key end

     0   :  { %8 = vsyncpa [#allocation3], 0  ;;  %s1118_s0 = inlined_call_operand.hbm [shape: f32[2,8,32], index: 0, kind: input, shape index: {}]   ;;  %s1119_s1 = inlined_call_operand.hbm [shape: f32[32,128], index: 1, kind: input, shape index: {}]   ;;  %s1120_s2 = inlined_call_operand.hbm [shape: f32[32,128], index: 2, kind: input, shape index: {}]   ;;  %s1121_s3 = inlined_call_operand.hbm [shape: f32[2,8,128], index: 3, kind: output, shape index: {}]  }
   0x1   :  { %10 = vsyncpa [#allocation3 + $0x1], 0 }
   0x2   :  { %11 = vsyncpa [#allocation6], 0 }
   0x3   :  { %12 = vsyncpa [#allocation4], 0 }
   0x4   :  { %14 = vsyncpa [#allocation4 + $0x1], 0  ;;  %s864_s12 = smov 0   ;;  %s866_s13 = smov 0  }
   0x5   :  { %s868_s14 = smov 0   ;;  %s870_s15 = smov 0  }
   0x6   :  { %s872_s16 = smov 0   ;;  %s874_s17 = smov 0  }
   0x7 LB: > { %s508_s18 = sadd.s32 4294967295, %s833_s17   ;;  %s509_s19 = sadd.s32 4294967294, %s833_s17   ;;  %s833_s17 = sphi %s874_s17, %s20_s17   ;;  %s829_s16 = sphi %s872_s16, %s1143_s16   ;;  %s825_s15 = sphi %s870_s15, %s1142_s15   ;;  %s821_s14 = sphi %s868_s14, %s1141_s14   ;;  %s817_s13 = sphi %s866_s13, %s1140_s13   ;;  %s813_s12 = sphi %s864_s12, %s1139_s12  }
   0x8   : > { %p54_p0 = scmp.ne.s32.totalorder %s817_s13, %s813_s12  ;;  %p898_p1 = scmp.eq.s32.totalorder %s508_s18, 0 }
   0x9   : > { %p902_p2 = scmp.eq.s32.totalorder %s508_s18, 1  ;;  %p128_p3 = scmp.eq.s32.totalorder %s509_s19, 1 }
   0xa   : > { %s1126_s20 = scalar_select %p898_p1, 1, 0 }
   0xb   : > { %p908_p4 = por %p898_p1, %p54_p0  ;;  %p510_p5 = scmp.ge.s32.totalorder %s833_s17, 1 }
   0xc   : > { %p913_p6 = por %p128_p3, %p54_p0  ;;  %p135_p7 = scmp.lt.s32.totalorder %s833_s17, 3 }
   0xd   : > { %s1128_s22 = scalar_select %p908_p4, 1, 0 }
   0xe   : > { %s1129_s23 = scalar_select %p913_p6, 1, 0 }
   0xf   : > { %p918_p8 = pnand %p510_p5, %p135_p7  ;;  %s835_s25 = smov [#allocation5]  }
  0x10   : > { %s147_s26 = sshll.u32 %s835_s25, 4  ;;  %s836_s28 = smov [#allocation7]   ;;  %s922_s26 = int_to_ptr.vmem [resolvable:$true] %s147_s26 }
  0x11   : > { %p583_p9 = pneg %p918_p8  ;;  %s160_s29 = sshll.u32 %s836_s28, 4  ;;  %s933_s29 = int_to_ptr.vmem [resolvable:$true] %s160_s29 }
  0x12   : > { %s661_s5 = scalar_lea.hbm %s1119_s1, 512 }
  0x13   : > { %p929_p11 = pnand %p583_p9, %p898_p1  ;;  %p662_p12 = scmp.ne.s32.totalorder %s1119_s1, %s661_s5 }
  0x14   : > { %p668_p5 = scmp.lt.u32.totalorder %s661_s5, %s1119_s1 }
  0x15   : > { %p663_p13 = pneg %p929_p11 }
  0x17   : > { %p664_p0 = pnand %p663_p13, %p662_p12 }
  0x19   : > { %p665_p3 = pneg %p664_p0 }
  0x1b   : > { %p670_p7 = pnand %p668_p5, %p665_p3 }
  0x1d   : > { %673 = shalt.err (!%p670_p7)
}
  0x1e   : > { %s674_s10 = scalar_lea.vmem %s922_s26, 512  ;;  %p682_p1 = scmp.lt.s32.totalorder %s922_s26, %s922_s26 }
  0x1f   : > { %p675_p9 = scmp.ne.s32.totalorder %s922_s26, %s674_s10  ;;  %p683_p12 = scmp.lt.s32.totalorder %s674_s10, %s674_s10 }
  0x21   : > { %p677_p10 = pnand %p675_p9, %p663_p13  ;;  %p684_p0 = por %p683_p12, %p682_p1 }
  0x23   : > { %p678_p6 = pneg %p677_p10 }
  0x25   : > { %p685_p4 = pnand %p684_p0, %p678_p6 }
  0x27   : > { %688 = shalt.err (!%p685_p4)
}
  0x28   : > { %s837_s11 = smov 128   ;;  %s838_s18 = smov 8  }
  0x29   : > { %586 = dma.hbm_to_vmem [thread:$0]  (!%p929_p11), %s1119_s1, 512, %s922_s26, [#allocation6], %s837_s11, %s837_s11, %s838_s18  }
  0x2a   : > { %s689_s4 = scalar_lea.hbm %s1120_s2, 512 }
  0x2b   : > { %p690_p1 = scmp.ne.s32.totalorder %s1120_s2, %s689_s4  ;;  %p696_p10 = scmp.lt.u32.totalorder %s689_s4, %s1120_s2 }
  0x2d   : > { %p692_p4 = pnand %p690_p1, %p663_p13 }
  0x2f   : > { %p693_p6 = pneg %p692_p4 }
  0x31   : > { %p698_p3 = pnand %p696_p10, %p693_p6 }
  0x33   : > { %701 = shalt.err (!%p698_p3)
}
  0x34   : > { %s702_s26 = scalar_lea.vmem %s933_s29, 512  ;;  %p710_p12 = scmp.lt.s32.totalorder %s933_s29, %s933_s29 }
  0x35   : > { %p703_p5 = scmp.ne.s32.totalorder %s933_s29, %s702_s26  ;;  %p711_p0 = scmp.lt.s32.totalorder %s702_s26, %s702_s26 }
  0x37   : > { %p705_p7 = pnand %p703_p5, %p663_p13  ;;  %p712_p1 = por %p711_p0, %p710_p12 }
  0x39   : > { %p706_p9 = pneg %p705_p7 }
  0x3b   : > { %p713_p4 = pnand %p712_p1, %p706_p9 }
  0x3d   : > { %716 = shalt.err (!%p713_p4)
}
  0x3e   : > { %589 = dma.hbm_to_vmem [thread:$0]  (!%p929_p11), %s1120_s2, 512, %s933_s29, [#allocation6], %s837_s11, %s837_s11, %s838_s18  }
  0x3f   : > { %s32_s19 = sadd.s32 1, %s829_s16  ;;  %s41_s25 = sadd.s32 1, %s821_s14 }
  0x40   : > { %p34_p13 = scmp.ge.s32.totalorder %s32_s19, 2  ;;  %p48_p6 = scmp.ne.s32.totalorder %s821_s14, %s817_s13 }
  0x41   : > { %p49_p10 = scmp.eq.s32.totalorder %s833_s17, 0  ;;  %p600_p3 = scmp.lt.s32.totalorder %s833_s17, 2 }
  0x42   : > { %s1145_s19 = smov (%p34_p13, %s32_s19), 0  ;;  %p997_p7 = por %p902_p2, %p48_p6 }
  0x43   : > { %p50_p5 = por %p49_p10, %p48_p6  ;;  %s36_s28 = ssub.s32 %s829_s16, %s1145_s19 }
  0x44   : > { %s1132_s27 = scalar_select %p997_p7, 1, 0 }
  0x45   : > { %s174_s30 = sand.u32 1, %s821_s14   ;;  %p39_p9 = scmp.eq.s32.totalorder %s36_s28, 0 }
  0x46   : > { %s514_s29 = sshll.u32 %s174_s30, 3  ;;  %s515_s11 = sshll.u32 %s829_s16, 7 }
  0x47   : > { %s1006_s18 = scalar_select %p39_p9, %s821_s14, %s41_s25  }
  0x48   : > { %s1011_s6 = scalar_lea.hbm %s1118_s0, %s515_s11  ;;  %s178_s21 = scalar_lea.vmem [#allocation2], %s514_s29 }
  0x49   : > { %s186_s7 = sshll.u32 %s178_s21, 4  ;;  %p1015_p2 = pnand %p600_p3, %p50_p5  ;;  %s1019_s7 = int_to_ptr.vmem [resolvable:$true] %s186_s7 }
  0x4a   : > { %s175_s26 = scalar_lea.sflag [#allocation3], %s174_s30  ;;  %s717_s9 = scalar_lea.hbm %s1011_s6, 128 }
  0x4b   : > { %p718_p11 = scmp.ne.s32.totalorder %s1011_s6, %s717_s9  ;;  %p719_p12 = pneg %p1015_p2 }
  0x4c   : > { %s722_s28 = scalar_lea.hbm %s1118_s0, 256  ;;  %p723_p4 = scmp.lt.u32.totalorder %s1011_s6, %s1118_s0 }
  0x4d   : > { %p720_p0 = pnand %p719_p12, %p718_p11  ;;  %p724_p13 = scmp.lt.u32.totalorder %s722_s28, %s717_s9 }
  0x4e   : > { %p726_p10 = scmp.lt.u32.totalorder %s717_s9, %s1011_s6 }
  0x4f   : > { %p721_p1 = pneg %p720_p0  ;;  %p725_p6 = por %p724_p13, %p723_p4 }
  0x51   : > { %p727_p3 = por %p726_p10, %p725_p6 }
  0x53   : > { %p728_p5 = pnand %p727_p3, %p721_p1 }
  0x55   : > { %731 = shalt.err (!%p728_p5)
}
  0x56   : > { %s732_s30 = scalar_lea.vmem %s1019_s7, 128  ;;  %s839_s4 = smov [#allocation2]  }
  0x57   : > { %p733_p9 = scmp.ne.s32.totalorder %s1019_s7, %s732_s30  ;;  %s737_s5 = sshll.u32 %s839_s4, 4  ;;  %s738_s5 = int_to_ptr.vmem [resolvable:$false] %s737_s5 }
  0x58   : > { %s739_s21 = scalar_lea.vmem %s738_s5, 256  ;;  %p740_p7 = scmp.lt.s32.totalorder %s1019_s7, %s738_s5 }
  0x59   : > { %p735_p11 = pnand %p733_p9, %p719_p12  ;;  %p741_p4 = scmp.lt.s32.totalorder %s739_s21, %s732_s30 }
  0x5b   : > { %p736_p0 = pneg %p735_p11  ;;  %p742_p13 = por %p741_p4, %p740_p7 }
  0x5d   : > { %p743_p6 = pnand %p742_p13, %p736_p0 }
  0x5f   : > { %746 = shalt.err (!%p743_p6)
}
  0x60   : > { %593 = dma.hbm_to_vmem [thread:$0]  (!%p1015_p2), %s1011_s6, 128, %s1019_s7, %s175_s26  }
  0x61   : > { %195 = sbr.rel (%p918_p8) target bundleno = 362 (0x16a), region = 32  ;;  %s1049_s9 = sand.u32 (!%p918_p8), 1, %s817_s13  }
  0x62   : > { %s517_s10 = sshll.u32 (!%p918_p8), %s1049_s9, 3  ;;  %s198_s25 = scalar_lea.sflag (!%p918_p8), [#allocation3], %s1049_s9 }
  0x63   : > { %s201_s28 = scalar_lea.vmem (!%p918_p8), [#allocation2], %s517_s10  ;;  %p1134_p7 = scmp.ne.s32.totalorder (!%p918_p8), %s1128_s22, 0 }
  0x68   : > { %800 = dma.done.wait (%p1134_p7), %s198_s25, 128  }
  0x69   : > { %802 = vsyncadd (%p1134_p7), %s198_s25, 4294967168  ;;  %p1135_p2 = scmp.ne.s32.totalorder %s1126_s20, 0 }
  0x6b   : > { %804 = dma.done.wait (%p1135_p2), [#allocation6], 1024  }
  0x6c   : > { %806 = vsyncadd (%p1135_p2), [#allocation6], 4294966272  ;;  %v840_v0 = vmov 0.0|0.0   ;;  %vm841_vm0 = vmmov 0   ;;  %v842_v1 = vmov 0.0   ;;  %v312_v2 = vld [vmem:[#allocation7] sm:$0xff] }
  0x6d   : > { %565 = vmatprep.subr.bf16.mxu1 %v840_v0  ;;  %556 = vmatprep.mubr.msk.f32.mxu1 %vm841_vm0, %v842_v1  ;;  %v313_v3 = vld [vmem:[#allocation7 + $0x8] sm:$0xff]  ;;  %v314_v4 = vld [vmem:[#allocation7 + $0x10] sm:$0xff]  ;;  %v315_v6 = vld [vmem:[#allocation7 + $0x18] sm:$0xff]  ;;  %vm237_vm1 = vcmask 261120   ;;  %s524_s20 = sshll.u32 %s825_s15, 7  ;;  %s231_s22 = scalar_lea.vmem [#allocation8], %s517_s10 }
  0x6e   : > { %559 = vmatprep.subr.bf16.mxu0 %v840_v0  ;;  %545 = vmatprep.mubr.msk.f32.mxu0 %vm841_vm0, %v842_v1  ;;  %v566_v5 = vpack.c.bf16 %v313_v3, %v312_v2  ;;  %v233_v7 = vld [vmem:[#allocation5] sm:$0xff]  ;;  %v234_v8 = vld [vmem:[#allocation5 + $0x8] sm:$0xff]  ;;  %v235_v9 = vld [vmem:[#allocation5 + $0x10] sm:$0xff]  ;;  %v569_v11 = vpack.c.bf16 %v315_v6, %v314_v4  ;;  %s409_s24 = sshll.u32 %s231_s22, 4  ;;  %s1069_s8 = scalar_lea.hbm %s1121_s3, %s524_s20  ;;  %s1071_s24 = int_to_ptr.vmem [resolvable:$true] %s409_s24 }
  0x6f   : > { %v236_v10 = vld [vmem:[#allocation5 + $0x18] sm:$0xff]  ;;  %v560_v13 = vpack.c.bf16 %v234_v8, %v233_v7  ;;  %s395_s26 = scalar_lea.sflag [#allocation4], %s1049_s9  ;;  %s747_s29 = scalar_lea.vmem %s1071_s24, 128 }
  0x70   : > { %567 = vmatpush3.bf16.msra.mxu1 %v566_v5  ;;  %v232_v12 = vld [vmem:[%s201_s28] sm:$0xff]  ;;  %v563_v14 = vpack.c.bf16 %v236_v10, %v235_v9  ;;  %p748_p8 = scmp.ne.s32.totalorder %s1071_s24, %s747_s29  ;;  %p1136_p12 = scmp.ne.s32.totalorder %s1132_s27, 0 }
  0x71   : > { %568 = vmatprep.subr.bf16.mxu1 %v840_v0  ;;  %561 = vmatpush3.bf16.msra.mxu0 %v560_v13  ;;  %v311_v15 = vmul.f32 %v232_v12, %v232_v12  ;;  %s843_s15 = smov [#allocation8]  }
  0x72   : > { %562 = vmatprep.subr.bf16.mxu0 %v840_v0  ;;  %p749_p1 = pnand %p748_p8, %p1136_p12  ;;  %s751_s11 = sshll.u32 %s843_s15, 4  ;;  %s752_s11 = int_to_ptr.vmem [resolvable:$false] %s751_s11 }
  0x73   : > { %s753_s30 = scalar_lea.vmem %s752_s11, 256  ;;  %p754_p3 = scmp.lt.s32.totalorder %s1071_s24, %s752_s11 }
  0x74   : > { %570 = vmatpush3.bf16.msra.mxu1 %v569_v11  ;;  %p750_p10 = pneg %p749_p1  ;;  %p755_p5 = scmp.lt.s32.totalorder %s753_s30, %s747_s29 }
  0x75   : > { %564 = vmatpush3.bf16.msra.mxu0 %v563_v14 }
  0x76   : > { %p756_p9 = por %p755_p5, %p754_p3 }
  0x77   : > { %557 = vmatmul.mubr.msk.f32.vlgmr.msra.gmra.mrb[0].mxu1 %vm237_vm1, %v311_v15 }
  0x78   : > { %546 = vmatmul.mubr.msk.f32.vlgmr.msra.gmra.mrb[0].mxu0 %vm237_vm1, %v232_v12  ;;  %p757_p11 = pnand %p756_p9, %p750_p10 }
 0x14a   : > { %v385_v16 = vpop.f32.mrb[0].mxu1 }
 0x14b   : > { %v389_v17 = vmax.f32 %v385_v16, 1e-24  ;;  %v558_v18 = vpop.f32.mrb[1].mxu1  ;;  %v307_v19 = vpop.f32.mrb[0].mxu0 }
 0x14c   : > { %v547_v20 = vpop.f32.mrb[1].mxu0 }
 0x14d   : > { %659 = vrsqrt.f32 %v389_v17 }
 0x157   : > { %v660_v21 = vpop.eup %659 }
 0x158   : > { %v391_v22 = vmul.f32 0.5, %v660_v21 }
 0x15a   : > { %v392_v23 = vmul.f32 %v391_v22, %v307_v19 }
 0x15c   : > { %393 = vst [vmem:[%s231_s22] sm:$0xff] %v392_v23 }
 0x15d   : > { %760 = shalt.err (!%p757_p11)
}
 0x15e   : > { %s761_s4 = scalar_lea.hbm %s1069_s8, 128  ;;  %s765_s9 = scalar_lea.hbm %s1121_s3, 256 }
 0x15f   : > { %p762_p0 = scmp.ne.s32.totalorder %s1069_s8, %s761_s4  ;;  %p766_p6 = scmp.lt.u32.totalorder %s1069_s8, %s1121_s3 }
 0x160   : > { %p767_p7 = scmp.lt.u32.totalorder %s765_s9, %s761_s4  ;;  %p769_p8 = scmp.lt.u32.totalorder %s761_s4, %s1069_s8 }
 0x161   : > { %p763_p4 = pnand %p762_p0, %p1136_p12 }
 0x162   : > { %p768_p2 = por %p767_p7, %p766_p6 }
 0x163   : > { %p764_p13 = pneg %p763_p4 }
 0x164   : > { %p770_p1 = por %p769_p8, %p768_p2 }
 0x166   : > { %p771_p10 = pnand %p770_p1, %p764_p13 }
 0x168   : > { %774 = shalt.err (!%p771_p10)
}
 0x169   : > { %581 = dma.vmem_to_hbm [thread:$0]  (%p1136_p12), %s1071_s24, 128, %s1069_s8, %s395_s26  }
 0x16a PF: > { %s421_s28 = sand.u32 1, %s813_s12   ;;  %p1137_p3 = scmp.ne.s32.totalorder %s1129_s23, 0 }
 0x16b   : > { %p1138_p5 = scmp.ge.s32.totalorder %s833_s17, 2  ;;  %s422_s20 = scalar_lea.sflag [#allocation4], %s421_s28 }
 0x16d   : > { %p595_p9 = pnand %p1138_p5, %p1137_p3 }
 0x16f   : > { %808 = dma.done.wait (!%p595_p9), %s422_s20, 128  }
 0x170   : > { %810 = vsyncadd (!%p595_p9), %s422_s20, 4294967168  ;;  %s20_s17 = sadd.s32 1, %s833_s17   ;;  %s1139_s12 = smov %s817_s13 }
 0x171   : > { %p17_p11 = scmp.ge.s32.totalorder %s20_s17, 4   ;;  %s1140_s13 = smov %s821_s14 }
 0x172   : > { %s1141_s14 = smov %s1006_s18  ;;  %s1142_s15 = smov %s829_s16 }
 0x173   : > { %s1143_s16 = smov %s1145_s19  ;;  %19 = sbr.rel (!%p17_p11) target bundleno = 7 (0x7), region = 85 }
 0x17a   :  { %427 = vsyncpa [#allocation3], 1 }
 0x17b   :  { %429 = vsyncpa [#allocation3 + $0x1], 1 }
 0x17c   :  { %430 = vsyncpa [#allocation6], 1 }
 0x17d   :  { %431 = vsyncpa [#allocation4], 1 }
 0x17e   :  { %433 = vsyncpa [#allocation4 + $0x1], 1 }

</bundles_post_ra>
